<compile_context>
chip_gen: v6e
topology: v6e:2x2x1
jax: 0.10.0
libtpu: 0.0.40
codegen_flags: <defaults>
</compile_context>

<pallas_src>
import functools

import jax
import jax.numpy as jnp
from jax.experimental import pallas as pl
from jax.experimental.pallas import tpu as pltpu


def _lstm_kernel(x2d_ref, h0_ref, c0_ref, wih_ref, whh_ref, b_ref,
                 wl_ref, bl_ref, out_ref, *, T, B, H):
    """Single-shot LSTM recurrence + final linear.

    x2d_ref : (T*B, E)  time-major embedded tokens (rows t*B:(t+1)*B = step t)
    h0/c0   : (B, H)    initial state
    wih     : (E, 4H)   input-to-hidden weights (transposed, gate order [i,f,g,o])
    whh     : (H, 4H)   hidden-to-hidden weights (transposed)
    b       : (1, 4H)   combined bias (b_ih + b_hh)
    wl      : (H, Lp)   final linear weights (transposed, lane-padded)
    bl      : (1, Lp)   final linear bias (lane-padded)
    out     : (B, Lp)   logits for the last timestep
    """
    # ---- hoisted input projection: ONE MXU op + ONE bias add for all T steps ----
    x_proj = (jnp.dot(x2d_ref[...], wih_ref[...],
                      preferred_element_type=jnp.float32)
              + b_ref[...])                                     # (T*B, 4H)

    whh = whh_ref[...]                                          # (H, 4H), load once

    # Lane mask selecting the 'g' quarter (tanh) of the fused [i|f|g|o] gate vector.
    # Built once outside the loop (broadcast_in_dim is not CSE'd by JAX).
    lane = jax.lax.broadcasted_iota(jnp.int32, (B, 4 * H), 1)
    g_mask = (lane >= 2 * H) & (lane < 3 * H)

    h = h0_ref[...]
    c = c0_ref[...]

    # T is small and static -> fully unrolled straight-line recurrence
    # (full LLO scheduling visibility across timesteps, zero grid-step overhead).
    for t in range(T):
        # x_proj slab for step t is sublane-aligned (B is a multiple of 8).
        gates = x_proj[t * B:(t + 1) * B, :] + jnp.dot(
            h, whh, preferred_element_type=jnp.float32)          # (B, 4H)

        # 2 full-vreg EUP launches instead of 4 masked partial-lane ones.
        sig = jax.nn.sigmoid(gates)
        tnh = jnp.tanh(gates)
        act = jnp.where(g_mask, tnh, sig)                        # [i|f|g|o]

        i = act[:, 0 * H:1 * H]
        f = act[:, 1 * H:2 * H]
        g = act[:, 2 * H:3 * H]
        o = act[:, 3 * H:4 * H]

        c = f * c + i * g
        h = o * jnp.tanh(c)

    # Final linear on the last hidden state; (B, Lp) output is a full, unmasked store.
    out_ref[...] = (jnp.dot(h, wl_ref[...], preferred_element_type=jnp.float32)
                    + bl_ref[...])


def text_rnn_forward(x_ids, params, h0, c0):
    """x_ids: (B, T) int32 token ids -> (B, label_num) logits."""
    B, T = x_ids.shape
    E = params["embedding"].shape[1]
    H = params["w_hh"].shape[0]
    L = params["w_lin"].shape[1]

    # Pad batch to full sublane groups (8) and labels to full lane groups (128).
    BP = ((B + 7) // 8) * 8
    LP = ((L + 127) // 128) * 128

    # Time-major embedding gather (gather directly in (T, BP) order -> no separate
    # transpose of the embedded tensor). Pad rows gather token 0; their results are
    # independent per-row and get sliced away after the kernel.
    ids_tm = jnp.pad(x_ids.T, ((0, 0), (0, BP - B)))             # (T, BP)
    x2d = params["embedding"][ids_tm].reshape(T * BP, E)         # (T*BP, E)

    h0p = jnp.pad(h0, ((0, BP - B), (0, 0)))
    c0p = jnp.pad(c0, ((0, BP - B), (0, 0)))
    wl = jnp.pad(params["w_lin"], ((0, 0), (0, LP - L)))
    bl = jnp.pad(params["b_lin"], ((0, 0), (0, LP - L)))

    kernel = functools.partial(_lstm_kernel, T=T, B=BP, H=H)

    # Everything is tiny (<1 MiB): whole-array VMEM residents, no grid, no pipelining.
    in_specs = [pl.BlockSpec(memory_space=pltpu.MemorySpace.VMEM)
                for _ in range(8)]
    out = pl.pallas_call(
        kernel,
        out_shape=jax.ShapeDtypeStruct((BP, LP), jnp.float32),
        in_specs=in_specs,
        out_specs=pl.BlockSpec(memory_space=pltpu.MemorySpace.VMEM),
    )(x2d, h0p, c0p,
      params["w_ih"], params["w_hh"], params["bias"], wl, bl)

    return out[:B, :L]


def reference_forward(x_ids, params, h0, c0):
    """Pure-JAX reference of the same semantics (for sanity check)."""
    emb = params["embedding"][x_ids]               # (B, T, E)
    H = params["w_hh"].shape[0]

    def step(carry, x_t):
        h, c = carry
        gates = x_t @ params["w_ih"] + h @ params["w_hh"] + params["bias"][0]
        i = jax.nn.sigmoid(gates[:, 0 * H:1 * H])
        f = jax.nn.sigmoid(gates[:, 1 * H:2 * H])
        g = jnp.tanh(gates[:, 2 * H:3 * H])
        o = jax.nn.sigmoid(gates[:, 3 * H:4 * H])
        c = f * c + i * g
        h = o * jnp.tanh(c)
        return (h, c), None

    (h, _), _ = jax.lax.scan(step, (h0, c0), jnp.transpose(emb, (1, 0, 2)))
    return h @ params["w_lin"] + params["b_lin"][0]


if __name__ == "__main__":
    # ---- synthetic config ----
    vocab_size, E, H, L = 50, 16, 32, 4
    B, T = 2, 8

    key = jax.random.PRNGKey(0)
    ks = jax.random.split(key, 10)

    params = {
        # nn.Embedding default init: N(0, 1)
        "embedding": jax.random.normal(ks[0], (vocab_size, E), jnp.float32),
        # nn.LSTM params (stored transposed for x @ W), gate order [i, f, g, o]
        "w_ih": jax.random.uniform(ks[1], (E, 4 * H), jnp.float32, -0.1, 0.1),
        "w_hh": jax.random.uniform(ks[2], (H, 4 * H), jnp.float32, -0.1, 0.1),
        "bias": jax.random.uniform(ks[3], (1, 4 * H), jnp.float32, -0.1, 0.1),
        # nn.Linear (transposed) + bias
        "w_lin": jax.random.uniform(ks[4], (H, L), jnp.float32, -0.1, 0.1),
        "b_lin": jax.random.uniform(ks[5], (1, L), jnp.float32, -0.1, 0.1),
    }

    # forward() draws h0, c0 ~ randn/20 each call; drawn deterministically here.
    h0 = jax.random.normal(ks[6], (B, H), jnp.float32) / 20.0
    c0 = jax.random.normal(ks[7], (B, H), jnp.float32) / 20.0

    # token ids
    x_ids = jax.random.randint(ks[8], (B, T), 0, vocab_size, dtype=jnp.int32)

    out = text_rnn_forward(x_ids, params, h0, c0)
    out = jax.block_until_ready(out)

    ref = reference_forward(x_ids, params, h0, c0)
    assert out.shape == (B, L)
    assert jnp.allclose(out, ref, atol=1e-5, rtol=1e-5), "mismatch vs reference"

    print("KERNEL_OK")
</pallas_src>

<mosaic_0001>
module attributes {stable_mosaic.version = 11 : i64} {
  func.func @_lstm_kernel(%arg0: memref<64x16xf32, #tpu.memory_space<vmem>>, %arg1: memref<8x32xf32, #tpu.memory_space<vmem>>, %arg2: memref<8x32xf32, #tpu.memory_space<vmem>>, %arg3: memref<16x128xf32, #tpu.memory_space<vmem>>, %arg4: memref<32x128xf32, #tpu.memory_space<vmem>>, %arg5: memref<1x128xf32, #tpu.memory_space<vmem>>, %arg6: memref<32x128xf32, #tpu.memory_space<vmem>>, %arg7: memref<1x128xf32, #tpu.memory_space<vmem>>, %arg8: memref<8x128xf32, #tpu.memory_space<vmem>>) attributes {dimension_semantics = [], scalar_prefetch = 0 : i64, scratch_operands = 0 : i64, tpu.core_type = #tpu.core_type<tc>} {
    %c0 = arith.constant 0 : index
    %c0_0 = arith.constant 0 : index
    %0 = vector.load %arg0[%c0, %c0_0] : memref<64x16xf32, #tpu.memory_space<vmem>>, vector<64x16xf32>
    %c0_1 = arith.constant 0 : index
    %c0_2 = arith.constant 0 : index
    %1 = vector.load %arg3[%c0_1, %c0_2] : memref<16x128xf32, #tpu.memory_space<vmem>>, vector<16x128xf32>
    %cst = arith.constant dense<0.000000e+00> : vector<64x128xf32>
    %2 = tpu.matmul %0, %1, %cst {dimension_numbers = #tpu.dot_dimension_numbers<[1], [0], [0], [1], [0, 0, 1, 1], [], []>} : vector<64x16xf32>, vector<16x128xf32>, vector<64x128xf32> -> vector<64x128xf32>
    %c0_3 = arith.constant 0 : index
    %c0_4 = arith.constant 0 : index
    %3 = vector.load %arg5[%c0_3, %c0_4] : memref<1x128xf32, #tpu.memory_space<vmem>>, vector<1x128xf32>
    %4 = vector.broadcast %3 : vector<1x128xf32> to vector<64x128xf32>
    %5 = arith.addf %2, %4 : vector<64x128xf32>
    %c0_5 = arith.constant 0 : index
    %c0_6 = arith.constant 0 : index
    %6 = vector.load %arg4[%c0_5, %c0_6] : memref<32x128xf32, #tpu.memory_space<vmem>>, vector<32x128xf32>
    %7 = tpu.iota {dimensions = array<i32: 1>} : vector<8x128xi32>
    %c64_i32 = arith.constant 64 : i32
    %8 = vector.broadcast %c64_i32 : i32 to vector<8x128xi32>
    %9 = arith.cmpi sge, %7, %8 : vector<8x128xi32>
    %c96_i32 = arith.constant 96 : i32
    %10 = vector.broadcast %c96_i32 : i32 to vector<8x128xi32>
    %11 = arith.cmpi slt, %7, %10 : vector<8x128xi32>
    %12 = arith.andi %9, %11 : vector<8x128xi1>
    %c0_7 = arith.constant 0 : index
    %c0_8 = arith.constant 0 : index
    %13 = vector.load %arg1[%c0_7, %c0_8] : memref<8x32xf32, #tpu.memory_space<vmem>>, vector<8x32xf32>
    %c0_9 = arith.constant 0 : index
    %c0_10 = arith.constant 0 : index
    %14 = vector.load %arg2[%c0_9, %c0_10] : memref<8x32xf32, #tpu.memory_space<vmem>>, vector<8x32xf32>
    %15 = vector.extract_strided_slice %5 {offsets = [0, 0], sizes = [8, 128], strides = [1, 1]} : vector<64x128xf32> to vector<8x128xf32>
    %cst_11 = arith.constant dense<0.000000e+00> : vector<8x128xf32>
    %16 = tpu.matmul %13, %6, %cst_11 {dimension_numbers = #tpu.dot_dimension_numbers<[1], [0], [0], [1], [0, 0, 1, 1], [], []>} : vector<8x32xf32>, vector<32x128xf32>, vector<8x128xf32> -> vector<8x128xf32>
    %17 = arith.addf %15, %16 : vector<8x128xf32>
    %18 = arith.negf %17 : vector<8x128xf32>
    %19 = math.exp %18 : vector<8x128xf32>
    %cst_12 = arith.constant 1.000000e+00 : f32
    %20 = vector.broadcast %cst_12 : f32 to vector<8x128xf32>
    %21 = arith.addf %20, %19 : vector<8x128xf32>
    %22 = arith.divf %20, %21 : vector<8x128xf32>
    %23 = math.tanh %17 : vector<8x128xf32>
    %24 = arith.select %12, %23, %22 : vector<8x128xi1>, vector<8x128xf32>
    %25 = vector.extract_strided_slice %24 {offsets = [0, 0], sizes = [8, 32], strides = [1, 1]} : vector<8x128xf32> to vector<8x32xf32>
    %26 = vector.extract_strided_slice %24 {offsets = [0, 32], sizes = [8, 32], strides = [1, 1]} : vector<8x128xf32> to vector<8x32xf32>
    %27 = vector.extract_strided_slice %24 {offsets = [0, 64], sizes = [8, 32], strides = [1, 1]} : vector<8x128xf32> to vector<8x32xf32>
    %28 = vector.extract_strided_slice %24 {offsets = [0, 96], sizes = [8, 32], strides = [1, 1]} : vector<8x128xf32> to vector<8x32xf32>
    %29 = arith.mulf %26, %14 : vector<8x32xf32>
    %30 = arith.mulf %25, %27 : vector<8x32xf32>
    %31 = arith.addf %29, %30 : vector<8x32xf32>
    %32 = math.tanh %31 : vector<8x32xf32>
    %33 = arith.mulf %28, %32 : vector<8x32xf32>
    %34 = vector.extract_strided_slice %5 {offsets = [8, 0], sizes = [8, 128], strides = [1, 1]} : vector<64x128xf32> to vector<8x128xf32>
    %cst_13 = arith.constant dense<0.000000e+00> : vector<8x128xf32>
    %35 = tpu.matmul %33, %6, %cst_13 {dimension_numbers = #tpu.dot_dimension_numbers<[1], [0], [0], [1], [0, 0, 1, 1], [], []>} : vector<8x32xf32>, vector<32x128xf32>, vector<8x128xf32> -> vector<8x128xf32>
    %36 = arith.addf %34, %35 : vector<8x128xf32>
    %37 = arith.negf %36 : vector<8x128xf32>
    %38 = math.exp %37 : vector<8x128xf32>
    %cst_14 = arith.constant 1.000000e+00 : f32
    %39 = vector.broadcast %cst_14 : f32 to vector<8x128xf32>
    %40 = arith.addf %39, %38 : vector<8x128xf32>
    %41 = arith.divf %39, %40 : vector<8x128xf32>
    %42 = math.tanh %36 : vector<8x128xf32>
    %43 = arith.select %12, %42, %41 : vector<8x128xi1>, vector<8x128xf32>
    %44 = vector.extract_strided_slice %43 {offsets = [0, 0], sizes = [8, 32], strides = [1, 1]} : vector<8x128xf32> to vector<8x32xf32>
    %45 = vector.extract_strided_slice %43 {offsets = [0, 32], sizes = [8, 32], strides = [1, 1]} : vector<8x128xf32> to vector<8x32xf32>
    %46 = vector.extract_strided_slice %43 {offsets = [0, 64], sizes = [8, 32], strides = [1, 1]} : vector<8x128xf32> to vector<8x32xf32>
    %47 = vector.extract_strided_slice %43 {offsets = [0, 96], sizes = [8, 32], strides = [1, 1]} : vector<8x128xf32> to vector<8x32xf32>
    %48 = arith.mulf %45, %31 : vector<8x32xf32>
    %49 = arith.mulf %44, %46 : vector<8x32xf32>
    %50 = arith.addf %48, %49 : vector<8x32xf32>
    %51 = math.tanh %50 : vector<8x32xf32>
    %52 = arith.mulf %47, %51 : vector<8x32xf32>
    %53 = vector.extract_strided_slice %5 {offsets = [16, 0], sizes = [8, 128], strides = [1, 1]} : vector<64x128xf32> to vector<8x128xf32>
    %cst_15 = arith.constant dense<0.000000e+00> : vector<8x128xf32>
    %54 = tpu.matmul %52, %6, %cst_15 {dimension_numbers = #tpu.dot_dimension_numbers<[1], [0], [0], [1], [0, 0, 1, 1], [], []>} : vector<8x32xf32>, vector<32x128xf32>, vector<8x128xf32> -> vector<8x128xf32>
    %55 = arith.addf %53, %54 : vector<8x128xf32>
    %56 = arith.negf %55 : vector<8x128xf32>
    %57 = math.exp %56 : vector<8x128xf32>
    %cst_16 = arith.constant 1.000000e+00 : f32
    %58 = vector.broadcast %cst_16 : f32 to vector<8x128xf32>
    %59 = arith.addf %58, %57 : vector<8x128xf32>
    %60 = arith.divf %58, %59 : vector<8x128xf32>
    %61 = math.tanh %55 : vector<8x128xf32>
    %62 = arith.select %12, %61, %60 : vector<8x128xi1>, vector<8x128xf32>
    %63 = vector.extract_strided_slice %62 {offsets = [0, 0], sizes = [8, 32], strides = [1, 1]} : vector<8x128xf32> to vector<8x32xf32>
    %64 = vector.extract_strided_slice %62 {offsets = [0, 32], sizes = [8, 32], strides = [1, 1]} : vector<8x128xf32> to vector<8x32xf32>
    %65 = vector.extract_strided_slice %62 {offsets = [0, 64], sizes = [8, 32], strides = [1, 1]} : vector<8x128xf32> to vector<8x32xf32>
    %66 = vector.extract_strided_slice %62 {offsets = [0, 96], sizes = [8, 32], strides = [1, 1]} : vector<8x128xf32> to vector<8x32xf32>
    %67 = arith.mulf %64, %50 : vector<8x32xf32>
    %68 = arith.mulf %63, %65 : vector<8x32xf32>
    %69 = arith.addf %67, %68 : vector<8x32xf32>
    %70 = math.tanh %69 : vector<8x32xf32>
    %71 = arith.mulf %66, %70 : vector<8x32xf32>
    %72 = vector.extract_strided_slice %5 {offsets = [24, 0], sizes = [8, 128], strides = [1, 1]} : vector<64x128xf32> to vector<8x128xf32>
    %cst_17 = arith.constant dense<0.000000e+00> : vector<8x128xf32>
    %73 = tpu.matmul %71, %6, %cst_17 {dimension_numbers = #tpu.dot_dimension_numbers<[1], [0], [0], [1], [0, 0, 1, 1], [], []>} : vector<8x32xf32>, vector<32x128xf32>, vector<8x128xf32> -> vector<8x128xf32>
    %74 = arith.addf %72, %73 : vector<8x128xf32>
    %75 = arith.negf %74 : vector<8x128xf32>
    %76 = math.exp %75 : vector<8x128xf32>
    %cst_18 = arith.constant 1.000000e+00 : f32
    %77 = vector.broadcast %cst_18 : f32 to vector<8x128xf32>
    %78 = arith.addf %77, %76 : vector<8x128xf32>
    %79 = arith.divf %77, %78 : vector<8x128xf32>
    %80 = math.tanh %74 : vector<8x128xf32>
    %81 = arith.select %12, %80, %79 : vector<8x128xi1>, vector<8x128xf32>
    %82 = vector.extract_strided_slice %81 {offsets = [0, 0], sizes = [8, 32], strides = [1, 1]} : vector<8x128xf32> to vector<8x32xf32>
    %83 = vector.extract_strided_slice %81 {offsets = [0, 32], sizes = [8, 32], strides = [1, 1]} : vector<8x128xf32> to vector<8x32xf32>
    %84 = vector.extract_strided_slice %81 {offsets = [0, 64], sizes = [8, 32], strides = [1, 1]} : vector<8x128xf32> to vector<8x32xf32>
    %85 = vector.extract_strided_slice %81 {offsets = [0, 96], sizes = [8, 32], strides = [1, 1]} : vector<8x128xf32> to vector<8x32xf32>
    %86 = arith.mulf %83, %69 : vector<8x32xf32>
    %87 = arith.mulf %82, %84 : vector<8x32xf32>
    %88 = arith.addf %86, %87 : vector<8x32xf32>
    %89 = math.tanh %88 : vector<8x32xf32>
    %90 = arith.mulf %85, %89 : vector<8x32xf32>
    %91 = vector.extract_strided_slice %5 {offsets = [32, 0], sizes = [8, 128], strides = [1, 1]} : vector<64x128xf32> to vector<8x128xf32>
    %cst_19 = arith.constant dense<0.000000e+00> : vector<8x128xf32>
    %92 = tpu.matmul %90, %6, %cst_19 {dimension_numbers = #tpu.dot_dimension_numbers<[1], [0], [0], [1], [0, 0, 1, 1], [], []>} : vector<8x32xf32>, vector<32x128xf32>, vector<8x128xf32> -> vector<8x128xf32>
    %93 = arith.addf %91, %92 : vector<8x128xf32>
    %94 = arith.negf %93 : vector<8x128xf32>
    %95 = math.exp %94 : vector<8x128xf32>
    %cst_20 = arith.constant 1.000000e+00 : f32
    %96 = vector.broadcast %cst_20 : f32 to vector<8x128xf32>
    %97 = arith.addf %96, %95 : vector<8x128xf32>
    %98 = arith.divf %96, %97 : vector<8x128xf32>
    %99 = math.tanh %93 : vector<8x128xf32>
    %100 = arith.select %12, %99, %98 : vector<8x128xi1>, vector<8x128xf32>
    %101 = vector.extract_strided_slice %100 {offsets = [0, 0], sizes = [8, 32], strides = [1, 1]} : vector<8x128xf32> to vector<8x32xf32>
    %102 = vector.extract_strided_slice %100 {offsets = [0, 32], sizes = [8, 32], strides = [1, 1]} : vector<8x128xf32> to vector<8x32xf32>
    %103 = vector.extract_strided_slice %100 {offsets = [0, 64], sizes = [8, 32], strides = [1, 1]} : vector<8x128xf32> to vector<8x32xf32>
    %104 = vector.extract_strided_slice %100 {offsets = [0, 96], sizes = [8, 32], strides = [1, 1]} : vector<8x128xf32> to vector<8x32xf32>
    %105 = arith.mulf %102, %88 : vector<8x32xf32>
    %106 = arith.mulf %101, %103 : vector<8x32xf32>
    %107 = arith.addf %105, %106 : vector<8x32xf32>
    %108 = math.tanh %107 : vector<8x32xf32>
    %109 = arith.mulf %104, %108 : vector<8x32xf32>
    %110 = vector.extract_strided_slice %5 {offsets = [40, 0], sizes = [8, 128], strides = [1, 1]} : vector<64x128xf32> to vector<8x128xf32>
    %cst_21 = arith.constant dense<0.000000e+00> : vector<8x128xf32>
    %111 = tpu.matmul %109, %6, %cst_21 {dimension_numbers = #tpu.dot_dimension_numbers<[1], [0], [0], [1], [0, 0, 1, 1], [], []>} : vector<8x32xf32>, vector<32x128xf32>, vector<8x128xf32> -> vector<8x128xf32>
    %112 = arith.addf %110, %111 : vector<8x128xf32>
    %113 = arith.negf %112 : vector<8x128xf32>
    %114 = math.exp %113 : vector<8x128xf32>
    %cst_22 = arith.constant 1.000000e+00 : f32
    %115 = vector.broadcast %cst_22 : f32 to vector<8x128xf32>
    %116 = arith.addf %115, %114 : vector<8x128xf32>
    %117 = arith.divf %115, %116 : vector<8x128xf32>
    %118 = math.tanh %112 : vector<8x128xf32>
    %119 = arith.select %12, %118, %117 : vector<8x128xi1>, vector<8x128xf32>
    %120 = vector.extract_strided_slice %119 {offsets = [0, 0], sizes = [8, 32], strides = [1, 1]} : vector<8x128xf32> to vector<8x32xf32>
    %121 = vector.extract_strided_slice %119 {offsets = [0, 32], sizes = [8, 32], strides = [1, 1]} : vector<8x128xf32> to vector<8x32xf32>
    %122 = vector.extract_strided_slice %119 {offsets = [0, 64], sizes = [8, 32], strides = [1, 1]} : vector<8x128xf32> to vector<8x32xf32>
    %123 = vector.extract_strided_slice %119 {offsets = [0, 96], sizes = [8, 32], strides = [1, 1]} : vector<8x128xf32> to vector<8x32xf32>
    %124 = arith.mulf %121, %107 : vector<8x32xf32>
    %125 = arith.mulf %120, %122 : vector<8x32xf32>
    %126 = arith.addf %124, %125 : vector<8x32xf32>
    %127 = math.tanh %126 : vector<8x32xf32>
    %128 = arith.mulf %123, %127 : vector<8x32xf32>
    %129 = vector.extract_strided_slice %5 {offsets = [48, 0], sizes = [8, 128], strides = [1, 1]} : vector<64x128xf32> to vector<8x128xf32>
    %cst_23 = arith.constant dense<0.000000e+00> : vector<8x128xf32>
    %130 = tpu.matmul %128, %6, %cst_23 {dimension_numbers = #tpu.dot_dimension_numbers<[1], [0], [0], [1], [0, 0, 1, 1], [], []>} : vector<8x32xf32>, vector<32x128xf32>, vector<8x128xf32> -> vector<8x128xf32>
    %131 = arith.addf %129, %130 : vector<8x128xf32>
    %132 = arith.negf %131 : vector<8x128xf32>
    %133 = math.exp %132 : vector<8x128xf32>
    %cst_24 = arith.constant 1.000000e+00 : f32
    %134 = vector.broadcast %cst_24 : f32 to vector<8x128xf32>
    %135 = arith.addf %134, %133 : vector<8x128xf32>
    %136 = arith.divf %134, %135 : vector<8x128xf32>
    %137 = math.tanh %131 : vector<8x128xf32>
    %138 = arith.select %12, %137, %136 : vector<8x128xi1>, vector<8x128xf32>
    %139 = vector.extract_strided_slice %138 {offsets = [0, 0], sizes = [8, 32], strides = [1, 1]} : vector<8x128xf32> to vector<8x32xf32>
    %140 = vector.extract_strided_slice %138 {offsets = [0, 32], sizes = [8, 32], strides = [1, 1]} : vector<8x128xf32> to vector<8x32xf32>
    %141 = vector.extract_strided_slice %138 {offsets = [0, 64], sizes = [8, 32], strides = [1, 1]} : vector<8x128xf32> to vector<8x32xf32>
    %142 = vector.extract_strided_slice %138 {offsets = [0, 96], sizes = [8, 32], strides = [1, 1]} : vector<8x128xf32> to vector<8x32xf32>
    %143 = arith.mulf %140, %126 : vector<8x32xf32>
    %144 = arith.mulf %139, %141 : vector<8x32xf32>
    %145 = arith.addf %143, %144 : vector<8x32xf32>
    %146 = math.tanh %145 : vector<8x32xf32>
    %147 = arith.mulf %142, %146 : vector<8x32xf32>
    %148 = vector.extract_strided_slice %5 {offsets = [56, 0], sizes = [8, 128], strides = [1, 1]} : vector<64x128xf32> to vector<8x128xf32>
    %cst_25 = arith.constant dense<0.000000e+00> : vector<8x128xf32>
    %149 = tpu.matmul %147, %6, %cst_25 {dimension_numbers = #tpu.dot_dimension_numbers<[1], [0], [0], [1], [0, 0, 1, 1], [], []>} : vector<8x32xf32>, vector<32x128xf32>, vector<8x128xf32> -> vector<8x128xf32>
    %150 = arith.addf %148, %149 : vector<8x128xf32>
    %151 = arith.negf %150 : vector<8x128xf32>
    %152 = math.exp %151 : vector<8x128xf32>
    %cst_26 = arith.constant 1.000000e+00 : f32
    %153 = vector.broadcast %cst_26 : f32 to vector<8x128xf32>
    %154 = arith.addf %153, %152 : vector<8x128xf32>
    %155 = arith.divf %153, %154 : vector<8x128xf32>
    %156 = math.tanh %150 : vector<8x128xf32>
    %157 = arith.select %12, %156, %155 : vector<8x128xi1>, vector<8x128xf32>
    %158 = vector.extract_strided_slice %157 {offsets = [0, 0], sizes = [8, 32], strides = [1, 1]} : vector<8x128xf32> to vector<8x32xf32>
    %159 = vector.extract_strided_slice %157 {offsets = [0, 32], sizes = [8, 32], strides = [1, 1]} : vector<8x128xf32> to vector<8x32xf32>
    %160 = vector.extract_strided_slice %157 {offsets = [0, 64], sizes = [8, 32], strides = [1, 1]} : vector<8x128xf32> to vector<8x32xf32>
    %161 = vector.extract_strided_slice %157 {offsets = [0, 96], sizes = [8, 32], strides = [1, 1]} : vector<8x128xf32> to vector<8x32xf32>
    %162 = arith.mulf %159, %145 : vector<8x32xf32>
    %163 = arith.mulf %158, %160 : vector<8x32xf32>
    %164 = arith.addf %162, %163 : vector<8x32xf32>
    %165 = math.tanh %164 : vector<8x32xf32>
    %166 = arith.mulf %161, %165 : vector<8x32xf32>
    %c0_27 = arith.constant 0 : index
    %c0_28 = arith.constant 0 : index
    %167 = vector.load %arg6[%c0_27, %c0_28] : memref<32x128xf32, #tpu.memory_space<vmem>>, vector<32x128xf32>
    %cst_29 = arith.constant dense<0.000000e+00> : vector<8x128xf32>
    %168 = tpu.matmul %166, %167, %cst_29 {dimension_numbers = #tpu.dot_dimension_numbers<[1], [0], [0], [1], [0, 0, 1, 1], [], []>} : vector<8x32xf32>, vector<32x128xf32>, vector<8x128xf32> -> vector<8x128xf32>
    %c0_30 = arith.constant 0 : index
    %c0_31 = arith.constant 0 : index
    %169 = vector.load %arg7[%c0_30, %c0_31] : memref<1x128xf32, #tpu.memory_space<vmem>>, vector<1x128xf32>
    %170 = vector.broadcast %169 : vector<1x128xf32> to vector<8x128xf32>
    %171 = arith.addf %168, %170 : vector<8x128xf32>
    %c0_32 = arith.constant 0 : index
    %c0_33 = arith.constant 0 : index
    %172 = vector.load %arg8[%c0_32, %c0_33] : memref<8x128xf32, #tpu.memory_space<vmem>>, vector<8x128xf32>
    tpu.vector_store %arg8[%c0_32, %c0_33], %171 {strides = array<i32>} : memref<8x128xf32, #tpu.memory_space<vmem>>, vector<8x128xf32>,
    return
  }
}

</mosaic_0001>

<bundles_post_ra>
// kernel: tpu_custom_call.1
= control target key start
LH: loop header
LB: loop body
LE: loop exit
PB: predicated region body
PF: predicated region fallthrough
CT: control target
= control target key end

     0   :  { %13 = vsyncpa [#allocation3], 0  ;;  %s1767_s0 = inlined_call_operand.vmem [shape: f32[64,16], index: 0, kind: input, shape index: {}]   ;;  %s1768_s1 = inlined_call_operand.hbm [shape: f32[8,32], index: 1, kind: input, shape index: {}]   ;;  %s1769_s2 = inlined_call_operand.hbm [shape: f32[8,32], index: 2, kind: input, shape index: {}]   ;;  %s1770_s3 = inlined_call_operand.vmem [shape: f32[16,128], index: 3, kind: input, shape index: {}]   ;;  %s1771_s4 = inlined_call_operand.vmem [shape: f32[32,128], index: 4, kind: input, shape index: {}]   ;;  %s1772_s5 = inlined_call_operand.vmem [shape: f32[1,128], index: 5, kind: input, shape index: {}]   ;;  %s1773_s6 = inlined_call_operand.vmem [shape: f32[32,128], index: 6, kind: input, shape index: {}]   ;;  %s1774_s7 = inlined_call_operand.vmem [shape: f32[1,128], index: 7, kind: input, shape index: {}]   ;;  %s1775_s8 = inlined_call_operand.hbm [shape: f32[8,128], index: 8, kind: output, shape index: {}]  }
   0x1   :  { %14 = vsyncpa [#allocation6], 0 }
   0x2   :  { %15 = vsyncpa [#allocation4], 0  ;;  %s1460_s27 = smov [#allocation2]   ;;  %s1461_s29 = smov [#allocation5]  }
   0x3   :  { %s24_s28 = sshll.u32 %s1460_s27, 4  ;;  %s34_s30 = sshll.u32 %s1461_s29, 4  ;;  %s25_s28 = int_to_ptr.vmem [resolvable:$true] %s24_s28  ;;  %s35_s30 = int_to_ptr.vmem [resolvable:$true] %s34_s30 }
   0x4   :  { %s1402_s9 = scalar_lea.vmem %s25_s28, 128  ;;  %p1407_p1 = scmp.lt.s32.totalorder %s25_s28, %s25_s28 }
   0x5   :  { %p1403_p0 = scmp.ne.s32.totalorder %s25_s28, %s1402_s9  ;;  %p1408_p2 = scmp.lt.s32.totalorder %s1402_s9, %s1402_s9 }
   0x7   :  { %p1409_p3 = por %p1408_p2, %p1407_p1 }
   0x9   :  { %p1410_p4 = pnand %p1409_p3, %p1403_p0 }
   0xb   :  { %1413 = shalt.err (!%p1410_p4)
}
   0xc   :  { %27 = dma.hbm_to_vmem [thread:$0]  %s1768_s1, 128, %s25_s28, [#allocation3]  }
   0xd   :  { %s1422_s12 = scalar_lea.vmem %s35_s30, 128  ;;  %p1427_p6 = scmp.lt.s32.totalorder %s35_s30, %s35_s30 }
   0xe   :  { %p1423_p5 = scmp.ne.s32.totalorder %s35_s30, %s1422_s12  ;;  %p1428_p7 = scmp.lt.s32.totalorder %s1422_s12, %s1422_s12 }
  0x10   :  { %p1429_p8 = por %p1428_p7, %p1427_p6 }
  0x12   :  { %p1430_p9 = pnand %p1429_p8, %p1423_p5 }
  0x14   :  { %1433 = shalt.err (!%p1430_p9)
}
  0x15   :  { %37 = dma.hbm_to_vmem [thread:$0]  %s1769_s2, 128, %s35_s30, [#allocation6]  }
  0x16   :  { %1454 = dma.done.wait [#allocation3], 128  }
  0x17   :  { %1455 = vsyncadd [#allocation3], 4294967168 }
  0x18   :  { %1456 = dma.done.wait [#allocation6], 128  }
  0x19   :  { %1457 = vsyncadd [#allocation6], 4294967168  ;;  %v1462_v0 = vmov 0.0   ;;  %vm1463_vm0 = vmmov 0   ;;  %v63_v1 = vld [vmem:[%s1770_s3 + $0x8] sm:$0xff]  ;;  %v1527_v2 = vld [vmem:[%s1771_s4 + $0x18] sm:$0xff]  ;;  %v205_v20 = vlaneseq }
  0x1a   :  { %1224 = vmatprep.subr.mxu1 %v1462_v0  ;;  %1232 = vmatprep.mubr.msk.f32.mxu1 %vm1463_vm0, %v1462_v0  ;;  %v62_v3 = vld [vmem:[%s1770_s3] sm:$0xff]  ;;  %v1536_v4 = vld [vmem:[%s1771_s4 + $0x10] sm:$0xff]  ;;  %vm71_vm1 = vcmask 130048   ;;  %v55_v6 = vld [vmem:[%s1767_s0 + $0x8] sm:$0xff]  ;;  %vm212_vm2 = vcmask 261120   ;;  %s1465_s29 = smov 32  }
  0x1b   :  { %1208 = vmatprep.subr.mxu0 %v63_v1  ;;  %1225 = vmatpush3.msra.mxu1 %v1527_v2  ;;  %v54_v5 = vld [vmem:[%s1767_s0] sm:$0xff]  ;;  %v1549_v7 = vld [vmem:[%s1771_s4 + $0x8] sm:$0xff]  ;;  %v206_v21 = vand.u32 127, %v205_v20  ;;  %v56_v52 = vld [vmem:[%s1767_s0 + $0x10] sm:$0xff]  ;;  %s1466_s26 = smov [#allocation7]  }
  0x1c   :  { %1209 = vmatpush3.msra.mxu0 %v63_v1  ;;  %1226 = vmatprep.subr.mxu1 %v1462_v0  ;;  %v1557_v8 = vld [vmem:[%s1771_s4] sm:$0xff]  ;;  %v211_v26 = vld [vmem:[#allocation5] sm:$0xff]  ;;  %v57_v53 = vld [vmem:[%s1767_s0 + $0x18] sm:$0xff] }
  0x1d   :  { %1210 = vmatprep.subr.mxu0 %v62_v3  ;;  %1227 = vmatpush3.msra.mxu1 %v1536_v4  ;;  %v210_v9 = vld [vmem:[#allocation2] sm:$0xff]  ;;  %vm207_vm3 = vcmp.ge.s32.totalorder %v206_v21, 64  ;;  %vm208_vm4 = vcmp.lt.s32.totalorder %v206_v21, 96  ;;  %v59_v55 = vld [vmem:[%s1767_s0 + $0x28] sm:$0xff]  ;;  %v60_v56 = vld [vmem:[%s1767_s0 + $0x30] sm:$0xff] }
  0x1e   :  { %1211 = vmatpush3.msra.mxu0 %v62_v3  ;;  %1212 = vmatprep.mubr.msk.f32.mxu0 %vm71_vm1, %v54_v5  ;;  %v1586_v11 = vld [vmem:[%s1772_s5] ss:$0 sm:$0xff]  ;;  %vm1589_vm5 = vmand %vm207_vm3, %vm208_vm4  ;;  %s1464_s5 = smov 64   ;;  %v61_v57 = vld [vmem:[%s1767_s0 + $0x38] sm:$0xff] }
  0x1f   :  { %1228 = vmatprep.subr.mxu1 %v1462_v0  ;;  %1213 = vmatmul.mubr.msk.f32.vlgmr.msra.gmra.mxu0 %vm71_vm1, %v55_v6  ;;  %v58_v54 = vld [vmem:[%s1767_s0 + $0x20] sm:$0xff]  ;;  %v1024_v22 = vld [vmem:[%s1773_s6 + $0x8] sm:$0xff] }
  0x20   :  { %1229 = vmatpush3.msra.mxu1 %v1549_v7  ;;  %1246 = vmatprep.subr.mxu0 %v1462_v0 }
  0x21   :  { %1230 = vmatprep.subr.mxu1 %v1462_v0  ;;  %1247 = vmatpush3.msra.mxu0 %v1527_v2 }
  0x22   :  { %1231 = vmatpush3.msra.mxu1 %v1557_v8  ;;  %1248 = vmatprep.subr.mxu0 %v1462_v0 }
  0x23   :  { %1233 = vmatmul.mubr.msk.f32.vlgmr.msra.gmra.mxu1 %vm212_vm2, %v210_v9  ;;  %1235 = vmatprep.subr.mxu1 %v1462_v0 }
  0x24   :  { %1236 = vmatpush3.msra.mxu1 %v1527_v2  ;;  %1243 = vmatprep.mubr.msk.f32.mxu1 %vm1463_vm0, %v1462_v0 }
  0x25   :  { %1237 = vmatprep.subr.mxu1 %v1462_v0  ;;  %1249 = vmatpush3.msra.mxu0 %v1536_v4 }
  0x26   :  { %1238 = vmatpush3.msra.mxu1 %v1536_v4  ;;  %1250 = vmatprep.subr.mxu0 %v1462_v0 }
  0x27   :  { %1239 = vmatprep.subr.mxu1 %v1462_v0  ;;  %1251 = vmatpush3.msra.mxu0 %v1549_v7 }
  0x28   :  { %1240 = vmatpush3.msra.mxu1 %v1549_v7  ;;  %1252 = vmatprep.subr.mxu0 %v1462_v0 }
  0x29   :  { %1241 = vmatprep.subr.mxu1 %v1462_v0  ;;  %1253 = vmatpush3.msra.mxu0 %v1557_v8 }
  0x2a   :  { %1242 = vmatpush3.msra.mxu1 %v1557_v8  ;;  %1268 = vmatprep.subr.mxu0 %v1462_v0 }
  0x2b   :  { %1257 = vmatprep.subr.mxu1 %v1462_v0  ;;  %1215 = vmatprep.mubr.msk.f32.mxu0 %vm71_vm1, %v56_v52 }
  0x2c   :  { %1216 = vmatmul.mubr.msk.f32.gmra.mxu0 %vm71_vm1, %v57_v53 }
  0x2d   :  { %1218 = vmatprep.mubr.msk.f32.mxu0 %vm71_vm1, %v58_v54 }
  0x30   :  { %1219 = vmatmul.mubr.msk.f32.gmra.mxu0 %vm71_vm1, %v59_v55 }
  0x31   :  { %1221 = vmatprep.mubr.msk.f32.mxu0 %vm71_vm1, %v60_v56 }
  0x34   :  { %1222 = vmatmul.mubr.msk.f32.gmra.mxu0 %vm71_vm1, %v61_v57 }
  0x35   :  { %1254 = vmatprep.mubr.msk.f32.mxu0 %vm1463_vm0, %v1462_v0 }
  0xdf   :  { %v1214_v10 = vpop.f32.mrf.mxu0 }
  0xe0   :  { %v168_v37 = vadd.f32 %v1214_v10, %v1586_v11 }
  0xe1   :  { %v162_v12 = vpop.f32.mrf.mxu0 }
  0xe2   :  { %v163_v13 = vadd.f32 %v1586_v11, %v162_v12 }
  0xe3   :  { %v282_v14 = vpop.f32.mrf.mxu1 }
  0xe4   :  { %v286_v15 = vadd.f32 %v282_v14, %v163_v13 }
  0xe5   :  { %v1234_v16 = vpop.f32.mrf.mxu1 }
  0xe6   :  { %v1136_v17 = vmul.f32 -1.442695, %v286_v15 }
  0xe8   :  { %1330 = vpow2.f32 %v1136_v17 }
  0xe9   :  { %1332 = vtanh.f32 %v286_v15 }
  0xec   :  { %v1217_v62 = vpop.f32.mrf.mxu0 }
  0xee   :  { %v172_v63 = vpop.f32.mrf.mxu0 }
  0xef   :  { %v173_v9 = vadd.f32 %v1586_v11, %v172_v63 }
  0xf0   :  { %v1655_v1 = vpop.f32.mrf.mxu0 }
  0xf2   :  { %v1657_v3 = vpop.f32.mrf.mxu0 }
  0xf4   :  { %v1659_v5 = vpop.f32.mrf.mxu0 }
  0xf5   :  { %v1331_v18 = vpop.eup %1330 }
  0xf6   :  { %v290_v19 = vadd.f32 1.0, %v1331_v18  ;;  %v1333_v23 = vpop.eup %1332  ;;  %v1661_v6 = vpop.f32.mrf.mxu0 }
  0xf8   :  { %1334 = vrcp.f32 %v290_v19 }
 0x105   :  { %v1335_v24 = vpop.eup %1334 }
 0x106   :  { %v294_v25 = vsel %vm1589_vm5, %v1333_v23, %v1335_v24 }
 0x107   :  { %301 = vrot.lane.b32.xlu0 %v294_v25, %s1464_s5 }
 0x10b   :  { %296 = vrot.lane.b32.xlu0 %v211_v26, %s1465_s29 }
 0x179   :  { %v302_v27 = vpop.permute.xlu0 %301 }
 0x17a   :  { %v304_v28 = vmul.f32 %v302_v27, %v294_v25 }
 0x17c   :  { %306 = vrot.lane.b32.xlu1 %v304_v28, %s1465_s29 }
 0x17d   :  { %v297_v29 = vpop.permute.xlu0 %296 }
 0x17e   :  { %v299_v30 = vmul.f32 %v297_v29, %v294_v25 }
 0x1ee   :  { %v307_v31 = vpop.permute.xlu1 %306 }
 0x1ef   :  { %v309_v32 = vadd.f32 %v307_v31, %v299_v30  ;;  %v178_v30 = vadd.f32 %v1217_v62, %v1586_v11 }
 0x1f1   :  { %1336 = vtanh.f32 %v309_v32 }
 0x1fe   :  { %v1337_v33 = vpop.eup %1336 }
 0x1ff   :  { %312 = vrot.lane.b32.xlu1 %v1337_v33, %s1464_s5 }
 0x271   :  { %v313_v34 = vpop.permute.xlu1 %312 }
 0x272   :  { %v315_v35 = vmul.f32 %v313_v34, %v294_v25 }
 0x274   :  { %317 = vrot.lane.b32.xlu0 %v315_v35, %s1465_s29 }
 0x2e6   :  { %v318_v36 = vpop.permute.xlu0 %317 }
 0x2e7   :  { %1244 = vmatmul.mubr.msk.f32.vlgmr.msra.gmra.mxu1 %vm212_vm2, %v318_v36 }
 0x2e8   :  { %1258 = vmatpush3.msra.mxu1 %v1527_v2  ;;  %1265 = vmatprep.mubr.msk.f32.mxu1 %vm1463_vm0, %v1462_v0 }
 0x2e9   :  { %1259 = vmatprep.subr.mxu1 %v1462_v0 }
 0x2ea   :  { %1260 = vmatpush3.msra.mxu1 %v1536_v4 }
 0x2eb   :  { %1261 = vmatprep.subr.mxu1 %v1462_v0 }
 0x2ec   :  { %1262 = vmatpush3.msra.mxu1 %v1549_v7 }
 0x2ed   :  { %1263 = vmatprep.subr.mxu1 %v1462_v0 }
 0x2ee   :  { %1264 = vmatpush3.msra.mxu1 %v1557_v8 }
 0x2ef   :  { %1279 = vmatprep.subr.mxu1 %v1462_v0 }
 0x3a7   :  { %v387_v38 = vpop.f32.mrf.mxu1 }
 0x3a8   :  { %v391_v39 = vadd.f32 %v387_v38, %v168_v37 }
 0x3a9   :  { %v1245_v40 = vpop.f32.mrf.mxu1 }
 0x3aa   :  { %v1138_v41 = vmul.f32 -1.442695, %v391_v39 }
 0x3ac   :  { %1338 = vpow2.f32 %v1138_v41 }
 0x3ad   :  { %1340 = vtanh.f32 %v391_v39 }
 0x3b9   :  { %v1339_v42 = vpop.eup %1338 }
 0x3ba   :  { %v395_v43 = vadd.f32 1.0, %v1339_v42  ;;  %v1341_v44 = vpop.eup %1340 }
 0x3bc   :  { %1342 = vrcp.f32 %v395_v43 }
 0x3c9   :  { %v1343_v45 = vpop.eup %1342 }
 0x3ca   :  { %v399_v46 = vsel %vm1589_vm5, %v1341_v44, %v1343_v45 }
 0x3cb   :  { %402 = vrot.lane.b32.xlu1 %v399_v46, %s1464_s5  ;;  %v400_v49 = vmul.f32 %v399_v46, %v309_v32 }
 0x43d   :  { %v403_v47 = vpop.permute.xlu1 %402 }
 0x43e   :  { %v405_v48 = vmul.f32 %v403_v47, %v399_v46 }
 0x440   :  { %407 = vrot.lane.b32.xlu0 %v405_v48, %s1465_s29 }
 0x4b2   :  { %v408_v50 = vpop.permute.xlu0 %407 }
 0x4b3   :  { %v410_v51 = vadd.f32 %v408_v50, %v400_v49  ;;  %v183_v49 = vadd.f32 %v1586_v11, %v1657_v3 }
 0x4b5   :  { %1344 = vtanh.f32 %v410_v51 }
 0x4c2   :  { %v1345_v58 = vpop.eup %1344 }
 0x4c3   :  { %413 = vrot.lane.b32.xlu1 %v1345_v58, %s1464_s5 }
 0x535   :  { %v414_v59 = vpop.permute.xlu1 %413 }
 0x536   :  { %v416_v60 = vmul.f32 %v414_v59, %v399_v46 }
 0x538   :  { %418 = vrot.lane.b32.xlu0 %v416_v60, %s1465_s29 }
 0x5aa   :  { %v419_v61 = vpop.permute.xlu0 %418 }
 0x5ab   :  { %1255 = vmatmul.mubr.msk.f32.vlgmr.msra.gmra.mxu0 %vm212_vm2, %v419_v61 }
 0x5ac   :  { %1269 = vmatpush3.msra.mxu0 %v1527_v2  ;;  %1276 = vmatprep.mubr.msk.f32.mxu0 %vm1463_vm0, %v1462_v0 }
 0x5ad   :  { %1270 = vmatprep.subr.mxu0 %v1462_v0 }
 0x5ae   :  { %1271 = vmatpush3.msra.mxu0 %v1536_v4 }
 0x5af   :  { %1272 = vmatprep.subr.mxu0 %v1462_v0 }
 0x5b0   :  { %1273 = vmatpush3.msra.mxu0 %v1549_v7 }
 0x5b1   :  { %1274 = vmatprep.subr.mxu0 %v1462_v0 }
 0x5b2   :  { %1275 = vmatpush3.msra.mxu0 %v1557_v8 }
 0x5b3   :  { %1290 = vmatprep.subr.mxu0 %v1462_v0 }
 0x66b   :  { %v488_v10 = vpop.f32.mrf.mxu0 }
 0x66c   :  { %v492_v12 = vadd.f32 %v488_v10, %v173_v9 }
 0x66d   :  { %v1256_v13 = vpop.f32.mrf.mxu0 }
 0x66e   :  { %v1140_v14 = vmul.f32 -1.442695, %v492_v12  ;;  %v188_v13 = vadd.f32 %v1655_v1, %v1586_v11 }
 0x670   :  { %1346 = vpow2.f32 %v1140_v14 }
 0x671   :  { %1348 = vtanh.f32 %v492_v12 }
 0x67d   :  { %v1347_v15 = vpop.eup %1346 }
 0x67e   :  { %v496_v16 = vadd.f32 1.0, %v1347_v15  ;;  %v1349_v17 = vpop.eup %1348 }
 0x680   :  { %1350 = vrcp.f32 %v496_v16 }
 0x68d   :  { %v1351_v18 = vpop.eup %1350 }
 0x68e   :  { %v500_v19 = vsel %vm1589_vm5, %v1349_v17, %v1351_v18 }
 0x68f   :  { %503 = vrot.lane.b32.xlu1 %v500_v19, %s1464_s5  ;;  %v501_v23 = vmul.f32 %v500_v19, %v410_v51 }
 0x701   :  { %v504_v20 = vpop.permute.xlu1 %503 }
 0x702   :  { %v506_v21 = vmul.f32 %v504_v20, %v500_v19 }
 0x704   :  { %508 = vrot.lane.b32.xlu0 %v506_v21, %s1465_s29 }
 0x776   :  { %v509_v24 = vpop.permute.xlu0 %508 }
 0x777   :  { %v511_v25 = vadd.f32 %v509_v24, %v501_v23 }
 0x779   :  { %1352 = vtanh.f32 %v511_v25 }
 0x786   :  { %v1353_v26 = vpop.eup %1352 }
 0x787   :  { %514 = vrot.lane.b32.xlu1 %v1353_v26, %s1464_s5 }
 0x7f9   :  { %v515_v27 = vpop.permute.xlu1 %514 }
 0x7fa   :  { %v517_v28 = vmul.f32 %v515_v27, %v500_v19 }
 0x7fc   :  { %519 = vrot.lane.b32.xlu0 %v517_v28, %s1465_s29  ;;  %v193_v28 = vadd.f32 %v1586_v11, %v1661_v6 }
 0x86e   :  { %v520_v29 = vpop.permute.xlu0 %519 }
 0x86f   :  { %1266 = vmatmul.mubr.msk.f32.vlgmr.msra.gmra.mxu1 %vm212_vm2, %v520_v29 }
 0x870   :  { %1280 = vmatpush3.msra.mxu1 %v1527_v2  ;;  %1287 = vmatprep.mubr.msk.f32.mxu1 %vm1463_vm0, %v1462_v0 }
 0x871   :  { %1281 = vmatprep.subr.mxu1 %v1462_v0 }
 0x872   :  { %1282 = vmatpush3.msra.mxu1 %v1536_v4 }
 0x873   :  { %1283 = vmatprep.subr.mxu1 %v1462_v0 }
 0x874   :  { %1284 = vmatpush3.msra.mxu1 %v1549_v7 }
 0x875   :  { %1285 = vmatprep.subr.mxu1 %v1462_v0 }
 0x876   :  { %1286 = vmatpush3.msra.mxu1 %v1557_v8 }
 0x877   :  { %1301 = vmatprep.subr.mxu1 %v1462_v0 }
 0x92f   :  { %v589_v31 = vpop.f32.mrf.mxu1 }
 0x930   :  { %v593_v32 = vadd.f32 %v589_v31, %v178_v30 }
 0x931   :  { %v1267_v33 = vpop.f32.mrf.mxu1 }
 0x932   :  { %v1142_v34 = vmul.f32 -1.442695, %v593_v32 }
 0x934   :  { %1354 = vpow2.f32 %v1142_v34 }
 0x935   :  { %1356 = vtanh.f32 %v593_v32 }
 0x941   :  { %v1355_v35 = vpop.eup %1354 }
 0x942   :  { %v597_v36 = vadd.f32 1.0, %v1355_v35  ;;  %v1357_v37 = vpop.eup %1356 }
 0x944   :  { %1358 = vrcp.f32 %v597_v36 }
 0x951   :  { %v1359_v38 = vpop.eup %1358 }
 0x952   :  { %v601_v39 = vsel %vm1589_vm5, %v1357_v37, %v1359_v38 }
 0x953   :  { %604 = vrot.lane.b32.xlu1 %v601_v39, %s1464_s5  ;;  %v602_v42 = vmul.f32 %v601_v39, %v511_v25 }
 0x9c5   :  { %v605_v40 = vpop.permute.xlu1 %604 }
 0x9c6   :  { %v607_v41 = vmul.f32 %v605_v40, %v601_v39 }
 0x9c8   :  { %609 = vrot.lane.b32.xlu0 %v607_v41, %s1465_s29 }
 0xa3a   :  { %v610_v43 = vpop.permute.xlu0 %609 }
 0xa3b   :  { %v612_v44 = vadd.f32 %v610_v43, %v602_v42 }
 0xa3d   :  { %1360 = vtanh.f32 %v612_v44 }
 0xa4a   :  { %v1361_v45 = vpop.eup %1360 }
 0xa4b   :  { %615 = vrot.lane.b32.xlu1 %v1361_v45, %s1464_s5 }
 0xabd   :  { %v616_v46 = vpop.permute.xlu1 %615 }
 0xabe   :  { %v618_v47 = vmul.f32 %v616_v46, %v601_v39  ;;  %v198_v46 = vadd.f32 %v1659_v5, %v1586_v11 }
 0xac0   :  { %620 = vrot.lane.b32.xlu0 %v618_v47, %s1465_s29 }
 0xb32   :  { %v621_v48 = vpop.permute.xlu0 %620 }
 0xb33   :  { %1277 = vmatmul.mubr.msk.f32.vlgmr.msra.gmra.mxu0 %vm212_vm2, %v621_v48 }
 0xb34   :  { %1291 = vmatpush3.msra.mxu0 %v1527_v2  ;;  %1298 = vmatprep.mubr.msk.f32.mxu0 %vm1463_vm0, %v1462_v0 }
 0xb35   :  { %1292 = vmatprep.subr.mxu0 %v1462_v0 }
 0xb36   :  { %1293 = vmatpush3.msra.mxu0 %v1536_v4 }
 0xb37   :  { %1294 = vmatprep.subr.mxu0 %v1462_v0 }
 0xb38   :  { %1295 = vmatpush3.msra.mxu0 %v1549_v7 }
 0xb39   :  { %1296 = vmatprep.subr.mxu0 %v1462_v0 }
 0xb3a   :  { %1297 = vmatpush3.msra.mxu0 %v1557_v8 }
 0xb3b   :  { %1312 = vmatprep.subr.mxu0 %v1462_v0 }
 0xbf3   :  { %v690_v50 = vpop.f32.mrf.mxu0 }
 0xbf4   :  { %v694_v51 = vadd.f32 %v690_v50, %v183_v49 }
 0xbf5   :  { %v1278_v52 = vpop.f32.mrf.mxu0 }
 0xbf6   :  { %v1144_v53 = vmul.f32 -1.442695, %v694_v51 }
 0xbf8   :  { %1362 = vpow2.f32 %v1144_v53 }
 0xbf9   :  { %1364 = vtanh.f32 %v694_v51 }
 0xc05   :  { %v1363_v54 = vpop.eup %1362 }
 0xc06   :  { %v698_v55 = vadd.f32 1.0, %v1363_v54  ;;  %v1365_v56 = vpop.eup %1364 }
 0xc08   :  { %1366 = vrcp.f32 %v698_v55 }
 0xc15   :  { %v1367_v57 = vpop.eup %1366 }
 0xc16   :  { %v702_v58 = vsel %vm1589_vm5, %v1365_v56, %v1367_v57 }
 0xc17   :  { %705 = vrot.lane.b32.xlu1 %v702_v58, %s1464_s5  ;;  %v703_v61 = vmul.f32 %v702_v58, %v612_v44 }
 0xc89   :  { %v706_v59 = vpop.permute.xlu1 %705 }
 0xc8a   :  { %v708_v60 = vmul.f32 %v706_v59, %v702_v58  ;;  %v1026_v59 = vld [vmem:[%s1773_s6 + $0x18] sm:$0xff] }
 0xc8c   :  { %710 = vrot.lane.b32.xlu0 %v708_v60, %s1465_s29  ;;  %v1025_v60 = vld [vmem:[%s1773_s6 + $0x10] sm:$0xff] }
 0xcfe   :  { %v711_v62 = vpop.permute.xlu0 %710 }
 0xcff   :  { %v713_v63 = vadd.f32 %v711_v62, %v703_v61  ;;  %v1023_v61 = vld [vmem:[%s1773_s6] sm:$0xff]  ;;  %s1116_s6 = sshll.u32 %s1466_s26, 4  ;;  %s1117_s6 = int_to_ptr.vmem [resolvable:$true] %s1116_s6 }
 0xd00   :  { %s1434_s27 = scalar_lea.vmem %s1117_s6, 128  ;;  %p1439_p11 = scmp.lt.s32.totalorder %s1117_s6, %s1117_s6 }
 0xd01   :  { %1368 = vtanh.f32 %v713_v63  ;;  %p1435_p10 = scmp.ne.s32.totalorder %s1117_s6, %s1434_s27  ;;  %p1440_p12 = scmp.lt.s32.totalorder %s1434_s27, %s1434_s27 }
 0xd03   :  { %p1441_p13 = por %p1440_p12, %p1439_p11 }
 0xd05   :  { %p1442_p0 = pnand %p1441_p13, %p1435_p10 }
 0xd0e   :  { %v1369_v3 = vpop.eup %1368 }
 0xd0f   :  { %716 = vrot.lane.b32.xlu1 %v1369_v3, %s1464_s5 }
 0xd81   :  { %v717_v9 = vpop.permute.xlu1 %716 }
 0xd82   :  { %v719_v10 = vmul.f32 %v717_v9, %v702_v58 }
 0xd84   :  { %721 = vrot.lane.b32.xlu0 %v719_v10, %s1465_s29  ;;  %v1151_v10 = vld [vmem:[%s1774_s7] ss:$0 sm:$0xff] }
 0xdf6   :  { %v722_v12 = vpop.permute.xlu0 %721 }
 0xdf7   :  { %1288 = vmatmul.mubr.msk.f32.vlgmr.msra.gmra.mxu1 %vm212_vm2, %v722_v12 }
 0xdf8   :  { %1302 = vmatpush3.msra.mxu1 %v1527_v2  ;;  %1309 = vmatprep.mubr.msk.f32.mxu1 %vm1463_vm0, %v1462_v0 }
 0xdf9   :  { %1303 = vmatprep.subr.mxu1 %v1462_v0 }
 0xdfa   :  { %1304 = vmatpush3.msra.mxu1 %v1536_v4 }
 0xdfb   :  { %1305 = vmatprep.subr.mxu1 %v1462_v0 }
 0xdfc   :  { %1306 = vmatpush3.msra.mxu1 %v1549_v7 }
 0xdfd   :  { %1307 = vmatprep.subr.mxu1 %v1462_v0 }
 0xdfe   :  { %1308 = vmatpush3.msra.mxu1 %v1557_v8 }
 0xeb7   :  { %v791_v14 = vpop.f32.mrf.mxu1 }
 0xeb8   :  { %v795_v2 = vadd.f32 %v791_v14, %v188_v13 }
 0xeb9   :  { %v1289_v15 = vpop.f32.mrf.mxu1 }
 0xeba   :  { %v1146_v16 = vmul.f32 -1.442695, %v795_v2 }
 0xebc   :  { %1370 = vpow2.f32 %v1146_v16 }
 0xebd   :  { %1372 = vtanh.f32 %v795_v2 }
 0xec9   :  { %v1371_v17 = vpop.eup %1370 }
 0xeca   :  { %v799_v18 = vadd.f32 1.0, %v1371_v17  ;;  %v1373_v4 = vpop.eup %1372 }
 0xecc   :  { %1374 = vrcp.f32 %v799_v18 }
 0xed9   :  { %v1375_v19 = vpop.eup %1374 }
 0xeda   :  { %v803_v7 = vsel %vm1589_vm5, %v1373_v4, %v1375_v19 }
 0xedb   :  { %806 = vrot.lane.b32.xlu1 %v803_v7, %s1464_s5  ;;  %v804_v1 = vmul.f32 %v803_v7, %v713_v63 }
 0xf4d   :  { %v807_v8 = vpop.permute.xlu1 %806 }
 0xf4e   :  { %v809_v20 = vmul.f32 %v807_v8, %v803_v7 }
 0xf50   :  { %811 = vrot.lane.b32.xlu0 %v809_v20, %s1465_s29 }
 0xfc2   :  { %v812_v21 = vpop.permute.xlu0 %811 }
 0xfc3   :  { %v814_v23 = vadd.f32 %v812_v21, %v804_v1 }
 0xfc5   :  { %1376 = vtanh.f32 %v814_v23 }
 0xfd2   :  { %v1377_v24 = vpop.eup %1376 }
 0xfd3   :  { %817 = vrot.lane.b32.xlu1 %v1377_v24, %s1464_s5 }
0x1045   :  { %v818_v25 = vpop.permute.xlu1 %817 }
0x1046   :  { %v820_v26 = vmul.f32 %v818_v25, %v803_v7 }
0x1048   :  { %822 = vrot.lane.b32.xlu0 %v820_v26, %s1465_s29 }
0x10ba   :  { %v823_v27 = vpop.permute.xlu0 %822 }
0x10bb   :  { %1299 = vmatmul.mubr.msk.f32.vlgmr.msra.gmra.mxu0 %vm212_vm2, %v823_v27 }
0x10bc   :  { %1320 = vmatprep.mubr.msk.f32.mxu0 %vm1463_vm0, %v1462_v0  ;;  %1313 = vmatpush3.msra.mxu0 %v1026_v59 }
0x10bd   :  { %1314 = vmatprep.subr.mxu0 %v1462_v0 }
0x10be   :  { %1315 = vmatpush3.msra.mxu0 %v1025_v60 }
0x10bf   :  { %1316 = vmatprep.subr.mxu0 %v1462_v0 }
0x10c0   :  { %1317 = vmatpush3.msra.mxu0 %v1024_v22 }
0x10c1   :  { %1318 = vmatprep.subr.mxu0 %v1462_v0 }
0x10c2   :  { %1319 = vmatpush3.msra.mxu0 %v1023_v61 }
0x117b   :  { %v892_v29 = vpop.f32.mrf.mxu0 }
0x117c   :  { %v896_v30 = vadd.f32 %v892_v29, %v193_v28 }
0x117d   :  { %v1300_v31 = vpop.f32.mrf.mxu0 }
0x117e   :  { %v1148_v32 = vmul.f32 -1.442695, %v896_v30 }
0x1180   :  { %1378 = vpow2.f32 %v1148_v32 }
0x1181   :  { %1380 = vtanh.f32 %v896_v30 }
0x118d   :  { %v1379_v33 = vpop.eup %1378 }
0x118e   :  { %v900_v34 = vadd.f32 1.0, %v1379_v33  ;;  %v1381_v35 = vpop.eup %1380 }
0x1190   :  { %1382 = vrcp.f32 %v900_v34 }
0x119d   :  { %v1383_v36 = vpop.eup %1382 }
0x119e   :  { %v904_v37 = vsel %vm1589_vm5, %v1381_v35, %v1383_v36 }
0x119f   :  { %907 = vrot.lane.b32.xlu1 %v904_v37, %s1464_s5  ;;  %v905_v6 = vmul.f32 %v904_v37, %v814_v23 }
0x1211   :  { %v908_v38 = vpop.permute.xlu1 %907 }
0x1212   :  { %v910_v39 = vmul.f32 %v908_v38, %v904_v37 }
0x1214   :  { %912 = vrot.lane.b32.xlu0 %v910_v39, %s1465_s29 }
0x1286   :  { %v913_v40 = vpop.permute.xlu0 %912 }
0x1287   :  { %v915_v41 = vadd.f32 %v913_v40, %v905_v6 }
0x1289   :  { %1384 = vtanh.f32 %v915_v41 }
0x1296   :  { %v1385_v42 = vpop.eup %1384 }
0x1297   :  { %918 = vrot.lane.b32.xlu1 %v1385_v42, %s1464_s5 }
0x1309   :  { %v919_v43 = vpop.permute.xlu1 %918 }
0x130a   :  { %v921_v44 = vmul.f32 %v919_v43, %v904_v37 }
0x130c   :  { %923 = vrot.lane.b32.xlu0 %v921_v44, %s1465_s29 }
0x137e   :  { %v924_v45 = vpop.permute.xlu0 %923 }
0x137f   :  { %1310 = vmatmul.mubr.msk.f32.vlgmr.msra.gmra.mxu1 %vm212_vm2, %v924_v45 }
0x143f   :  { %v993_v47 = vpop.f32.mrf.mxu1 }
0x1440   :  { %v997_v48 = vadd.f32 %v993_v47, %v198_v46 }
0x1441   :  { %v1311_v49 = vpop.f32.mrf.mxu1 }
0x1442   :  { %v1150_v50 = vmul.f32 -1.442695, %v997_v48 }
0x1444   :  { %1386 = vpow2.f32 %v1150_v50 }
0x1445   :  { %1388 = vtanh.f32 %v997_v48 }
0x1451   :  { %v1387_v51 = vpop.eup %1386 }
0x1452   :  { %v1001_v52 = vadd.f32 1.0, %v1387_v51  ;;  %v1389_v53 = vpop.eup %1388 }
0x1454   :  { %1390 = vrcp.f32 %v1001_v52 }
0x1461   :  { %v1391_v54 = vpop.eup %1390 }
0x1462   :  { %v1005_v55 = vsel %vm1589_vm5, %v1389_v53, %v1391_v54 }
0x1463   :  { %1008 = vrot.lane.b32.xlu1 %v1005_v55, %s1464_s5  ;;  %v1006_v11 = vmul.f32 %v1005_v55, %v915_v41 }
0x14d5   :  { %v1009_v56 = vpop.permute.xlu1 %1008 }
0x14d6   :  { %v1011_v57 = vmul.f32 %v1009_v56, %v1005_v55 }
0x14d8   :  { %1013 = vrot.lane.b32.xlu0 %v1011_v57, %s1465_s29 }
0x154a   :  { %v1014_v5 = vpop.permute.xlu0 %1013 }
0x154b   :  { %v1016_v58 = vadd.f32 %v1014_v5, %v1006_v11 }
0x154d   :  { %1392 = vtanh.f32 %v1016_v58 }
0x155a   :  { %v1393_v62 = vpop.eup %1392 }
0x155b   :  { %1019 = vrot.lane.b32.xlu1 %v1393_v62, %s1464_s5 }
0x15cd   :  { %v1020_v63 = vpop.permute.xlu1 %1019 }
0x15ce   :  { %v1022_v3 = vmul.f32 %v1020_v63, %v1005_v55 }
0x15d0   :  { %1035 = vrot.lane.b32.xlu0 %v1022_v3, %s1465_s29 }
0x1642   :  { %v1036_v9 = vpop.permute.xlu0 %1035 }
0x1643   :  { %1321 = vmatmul.mubr.msk.f32.vlgmr.msra.gmra.mxu0 %vm212_vm2, %v1036_v9 }
0x1703   :  { %v1105_v12 = vpop.f32.mrf.mxu0 }
0x1704   :  { %v1106_v13 = vadd.f32 %v1151_v10, %v1105_v12 }
0x1705   :  { %v1322_v0 = vpop.f32.mrf.mxu0 }
0x1706   :  { %1109 = vst [vmem:[#allocation7] sm:$0xff] %v1106_v13 }
0x1707   :  { %1445 = shalt.err (!%p1442_p0)
}
0x1708   :  { %1119 = dma.vmem_to_hbm [thread:$0]  %s1117_s6, 128, %s1775_s8, [#allocation4]  }
0x1709   :  { %1458 = dma.done.wait [#allocation4], 128  }
0x170a   :  { %1459 = vsyncadd [#allocation4], 4294967168 }
0x170b   :  { %1123 = vsyncpa [#allocation3], 1 }
0x170c   :  { %1124 = vsyncpa [#allocation6], 1 }
0x170d   :  { %1125 = vsyncpa [#allocation4], 1 }

</bundles_post_ra>
